<compile_context>
chip_gen: v7x
topology: tpu7x:2x2x1
jax: 0.10.0
libtpu: 0.0.40
codegen_flags: <defaults>
</compile_context>

<pallas_src>
import functools

import jax
import jax.numpy as jnp
from jax.experimental import pallas as pl
from jax.experimental.pallas import tpu as pltpu

NEG_SLOPE = 0.3                      # F.leaky_relu(t, 0.3)
COMPUTE_DTYPE = jnp.bfloat16         # HBM dtype of intermediate activations
LT_TARGET = 16384                    # max output-length tile (multiple of 128)


def _round_up(x, m):
    return ((x + m - 1) // m) * m


# ----------------------------------------------------------------------------
# Pallas kernel: valid Conv1d + bias + leaky_relu(0.3) over `n_in` channel
# groups, channels-first (C, L) tiles -> lane-dense output stores.
# Static per-group `offsets` fold the centered crop into the convolution.
# ----------------------------------------------------------------------------
def _conv1d_lrelu_kernel(*refs, n_in, K, offsets, has_halo):
    """refs layout (set by conv1d_lrelu_pallas):
        [x_0, (halo_0), x_1, (halo_1), ..., w_0, ..., w_{n-1}, bias, out]
      x_i    : (C_i, L_block)      input tile (any float dtype)
      halo_i : (C_i, off_i+K-1)    first samples of the next tile (multi-tile only)
      w_i    : (K, Cout, C_i)      pre-transposed conv weight (f32)
      bias   : (Cout, 1)           f32
      out    : (Cout, lt)
    """
    step = 2 if has_halo else 1
    xs = refs[0:n_in * step:step]
    hs = refs[1:n_in * step:step] if has_halo else (None,) * n_in
    ws = refs[n_in * step:n_in * step + n_in]
    b_ref = refs[n_in * step + n_in]
    o_ref = refs[n_in * step + n_in + 1]
    lt = o_ref.shape[-1]                         # output columns in this tile

    acc = None
    for x_ref, h_ref, w_ref, off in zip(xs, hs, ws, offsets):
        xv = x_ref[...].astype(jnp.float32)      # (C, L_block), cast is in-VMEM
        if h_ref is not None:
            # Tiny lane-axis concat of the next tile's head (off + K - 1 samples).
            xv = jnp.concatenate([xv, h_ref[...].astype(jnp.float32)], axis=-1)
        for k in range(K):
            # Tiny (Cout x C) @ (C x lt) MXU matmul per tap; the first tap
            # initialises the f32 accumulator (no zeros materialisation).
            # TODO(synk): collapse the K taps / channel groups into one stacked
            # matmul (review item); negligible here since the block is HBM-bound.
            tap = jnp.dot(w_ref[k].astype(jnp.float32),
                          xv[:, off + k:off + k + lt],
                          preferred_element_type=jnp.float32)
            acc = tap if acc is None else acc + tap
    acc = acc + b_ref[...]                               # f32 bias
    acc = jnp.where(acc >= 0, acc, NEG_SLOPE * acc)      # leaky_relu(0.3) in f32
    o_ref[...] = acc.astype(o_ref.dtype)


def _build_halo(x, lt, n_tiles, halo_len):
    """(B, C, L) -> (B, n_tiles, C, halo_len): the first `halo_len` samples of the
    tile following each main tile, built from strided slices (no gather).  Entries
    past L are zeros; they only feed output columns the masked store drops."""
    n_b, n_c, _ = x.shape
    cols = []
    for j in range(halo_len):
        col = x[:, :, lt + j::lt][:, :, :n_tiles]          # (B, C, <=n_tiles)
        pad = n_tiles - col.shape[2]
        if pad:
            col = jnp.pad(col, ((0, 0), (0, 0), (0, pad)))
        cols.append(col)
    halo = jnp.stack(cols, axis=-1)                        # (B, C, n_tiles, hl)
    return jnp.transpose(halo, (0, 2, 1, 3))               # (B, n_tiles, C, hl)


def conv1d_lrelu_pallas(inputs, weights, bias, offsets=None, *,
                        out_dtype=jnp.float32, lt_target=LT_TARGET):
    """Fused valid Conv1d + bias + leaky_relu(0.3) over the (virtual) channel concat
    of `inputs`, each consumed from element `offsets[i]` onward (fuses centered_crop).

    inputs  : list of (B, C_i, L_i) arrays (dtypes may differ; never padded/copied).
    weights : list of (K, Cout, C_i) pre-transposed kernels (one per input group).
    bias    : (Cout,)
    returns (B, Cout, lout) with lout = min_i(L_i - offsets[i]) - K + 1.
    """
    n_in = len(inputs)
    offsets = tuple(int(o) for o in (offsets or (0,) * n_in))
    B = inputs[0].shape[0]
    K, cout, _ = weights[0].shape
    lout = min(x.shape[2] - o for x, o in zip(inputs, offsets)) - K + 1
    assert lout >= 1

    # --- tiling: the largest tile that fits; usually one full-length tile. -------
    n_tiles = max(1, pl.cdiv(lout, lt_target))
    if B * n_tiles < 2 and lout >= 256:
        n_tiles = 2            # keep >= 2 parallel grid steps (v7x dual TensorCore)
    if n_tiles > 1:
        lt = _round_up(pl.cdiv(lout, n_tiles), 128)   # lane-dense 128-multiple tiles
        n_tiles = pl.cdiv(lout, lt)
    has_halo = n_tiles > 1
    if not has_halo:
        lt = lout                                     # full-array blocks, no padding

    args, in_specs = [], []
    for x, off in zip(inputs, offsets):
        c = x.shape[1]
        if has_halo:
            args.append(x)
            in_specs.append(pl.BlockSpec((None, c, lt), lambda b, t: (b, 0, t)))
            hl = max(off + K - 1, 1)
            args.append(_build_halo(x, lt, n_tiles, hl))
            in_specs.append(pl.BlockSpec((None, None, c, hl),
                                         lambda b, t: (b, t, 0, 0)))
        else:
            args.append(x)     # no pad / cast copy: kernel reads the array as-is
            in_specs.append(pl.BlockSpec((None, c, x.shape[2]),
                                         lambda b, t: (b, 0, 0)))
    for w in weights:
        wf = w.astype(jnp.float32)
        args.append(wf)
        in_specs.append(pl.BlockSpec(wf.shape, lambda b, t: (0, 0, 0)))
    args.append(bias.astype(jnp.float32).reshape(cout, 1))
    in_specs.append(pl.BlockSpec((cout, 1), lambda b, t: (0, 0)))

    # VMEM cap ~ double-buffered working set (+ in-kernel f32 copies) with margin,
    # clamped to [32 MiB, 48 MiB] so it is safe on v7x's 64 MiB physical VMEM.
    work = 0
    for x in inputs:
        bl = (lt + 256) if has_halo else x.shape[2]
        work += 2 * x.shape[1] * bl * (jnp.dtype(x.dtype).itemsize + 4)
    work += 4 * cout * lt * jnp.dtype(out_dtype).itemsize
    work += 2 * sum(int(w.size) * 4 for w in weights)
    vmem_limit = int(min(max(work + (8 << 20), 32 << 20), 48 << 20))

    out = pl.pallas_call(
        functools.partial(_conv1d_lrelu_kernel, n_in=n_in, K=K,
                          offsets=offsets, has_halo=has_halo),
        out_shape=jax.ShapeDtypeStruct((B, cout, lout), out_dtype),
        grid=(B, n_tiles),
        in_specs=in_specs,
        out_specs=pl.BlockSpec((None, cout, lt), lambda b, t: (b, 0, t)),
        compiler_params=pltpu.CompilerParams(
            dimension_semantics=("parallel", "parallel"),
            vmem_limit_bytes=vmem_limit),
    )(*args)
    return out


# ----------------------------------------------------------------------------
# XLA glue (NCL layout): linear upsample (align_corners=False) and centered crop
# (the crop is only used by the pure-JAX reference path; the Pallas path fuses it).
# ----------------------------------------------------------------------------
def linear_interpolate_ncl(x, out_len):
    """F.interpolate(x, out_len, mode='linear', align_corners=False); x: (B, C, L)."""
    # TODO(synk): fold this 2-tap interpolation (and its interleave) into the up-conv
    # kernel to remove the HBM round trip of the upsampled tensor.
    _, _, lin = x.shape
    scale = lin / out_len
    i = jnp.arange(out_len, dtype=jnp.float32)
    src = jnp.clip((i + 0.5) * scale - 0.5, 0.0, None)
    i0 = jnp.minimum(jnp.floor(src).astype(jnp.int32), lin - 1)
    i1 = jnp.minimum(i0 + 1, lin - 1)
    w1 = src - i0.astype(jnp.float32)
    w0 = 1.0 - w1
    xf = x.astype(jnp.float32)
    y = jnp.take(xf, i0, axis=2) * w0 + jnp.take(xf, i1, axis=2) * w1
    return y.astype(x.dtype)


def centered_crop_ncl(t, target_len):
    """centered_crop along the last axis; matches t[:, :, d//2 : -d + d//2]."""
    l = t.shape[2]
    d = l - target_len
    if d == 0:
        return t
    return t[:, :, d // 2: l - d + d // 2]


# ----------------------------------------------------------------------------
# Parameters / init (weights pre-transposed once for the Pallas path).
# ----------------------------------------------------------------------------
def xavier_uniform(key, shape):
    cout, cin, k = shape
    fan_in, fan_out = cin * k, cout * k
    a = (6.0 / (fan_in + fan_out)) ** 0.5
    return jax.random.uniform(key, shape, jnp.float32, -a, a)


def _prep_weight(w_ock):
    """(Cout, Cin, K) PyTorch Conv1d layout -> (K, Cout, Cin) f32."""
    return jnp.transpose(w_ock, (2, 0, 1)).astype(jnp.float32)


def init_resample_block(key, input_channels, down_channels, down_k, up_k,
                        output_channels=None):
    output_channels = input_channels if not output_channels else output_channels
    k1, k2 = jax.random.split(key)
    down_w = xavier_uniform(k1, (down_channels, input_channels, down_k))
    up_w = xavier_uniform(
        k2, (output_channels, down_channels + input_channels, up_k))
    return {
        # raw PyTorch-layout params (used by the pure-JAX reference path)
        "down_w": down_w, "down_b": jnp.zeros((down_channels,), jnp.float32),
        "up_w": up_w, "up_b": jnp.zeros((output_channels,), jnp.float32),
        # pre-transposed kernels for the Pallas path; the up-conv weight is split
        # into its skip / upsampled slabs so the channel concat is never in HBM.
        "down_wk": _prep_weight(down_w),
        "up_wk_skip": _prep_weight(up_w[:, :input_channels, :]),
        "up_wk_inner": _prep_weight(up_w[:, input_channels:, :]),
    }


# ----------------------------------------------------------------------------
# Pure-JAX reference conv (lax.conv) mirroring the same dtype policy.
# ----------------------------------------------------------------------------
def _ref_conv1d_lrelu(x_ncl, w_ock, bias, out_dtype):
    y = jax.lax.conv_general_dilated(
        x_ncl.astype(jnp.float32), w_ock.astype(jnp.float32),
        window_strides=(1,), padding="VALID",
        dimension_numbers=("NCH", "OIH", "NCH"))
    y = y + bias.astype(jnp.float32)[None, :, None]
    y = jnp.where(y >= 0, y, NEG_SLOPE * y)
    return y.astype(out_dtype)


# ----------------------------------------------------------------------------
# ResampleBlock forward (functional), matching the PyTorch module semantics.
# ----------------------------------------------------------------------------
def resample_block_forward(params, x_ncl, inner_module, resample=True,
                           use_pallas=True):
    """x_ncl: (B, C, L), PyTorch NCL layout.  Returns (B, Cout, Lout)."""
    saved = x_ncl
    # TODO(synk): fuse the stride-2 decimation into the down-conv kernel (strided
    # VMEM read) to drop this half-length HBM round trip; kept as XLA glue for
    # lowering robustness.
    decimated = x_ncl[:, :, ::2] if resample else x_ncl

    if use_pallas:
        down = conv1d_lrelu_pallas([decimated], [params["down_wk"]],
                                   params["down_b"], out_dtype=COMPUTE_DTYPE)
    else:
        down = _ref_conv1d_lrelu(decimated, params["down_w"], params["down_b"],
                                 COMPUTE_DTYPE)

    inner = inner_module(down)

    if resample:
        upsampled = linear_interpolate_ncl(inner, inner.shape[2] * 2 - 1)
    else:
        upsampled = inner
    d = saved.shape[2] - upsampled.shape[2]

    if use_pallas:
        # centered crop fused via the skip input's element offset; skip stays f32;
        # skip + upsampled are two channel groups (no materialised concat).
        out = conv1d_lrelu_pallas(
            [saved, upsampled],
            [params["up_wk_skip"], params["up_wk_inner"]],
            params["up_b"], offsets=(d // 2, 0), out_dtype=x_ncl.dtype)
    else:
        cropped = centered_crop_ncl(saved, upsampled.shape[2])
        enriched = jnp.concatenate([cropped.astype(jnp.float32),
                                    upsampled.astype(jnp.float32)], axis=1)
        out = _ref_conv1d_lrelu(enriched, params["up_w"], params["up_b"],
                                x_ncl.dtype)
    return out


if __name__ == "__main__":
    key = jax.random.PRNGKey(0)
    k_param, k_x = jax.random.split(key)

    # Small shapes: batch=2, input_channels=4, length=16, down_channels=6,
    # down_kernel_size=3, up_kernel_size=3.
    B, Cin, L = 2, 4, 16
    down_channels, down_k, up_k = 6, 3, 3

    params = init_resample_block(k_param, Cin, down_channels, down_k, up_k)
    x = jax.random.normal(k_x, (B, Cin, L), jnp.float32)   # PyTorch NCL layout
    inner_module = lambda t: t                              # identity inner module

    # resample=True path (decimation + linear upsample)
    out = jax.block_until_ready(
        resample_block_forward(params, x, inner_module, resample=True))
    ref = jax.block_until_ready(
        resample_block_forward(params, x, inner_module, resample=True,
                               use_pallas=False))
    assert out.shape == (B, Cin, 9), out.shape
    assert out.dtype == x.dtype, out.dtype
    err = float(jnp.max(jnp.abs(out - ref)))
    assert err < 2e-2, err

    # resample=False path (the two top-level convolutions)
    out2 = jax.block_until_ready(
        resample_block_forward(params, x, inner_module, resample=False))
    ref2 = jax.block_until_ready(
        resample_block_forward(params, x, inner_module, resample=False,
                               use_pallas=False))
    assert out2.shape == (B, Cin, 12), out2.shape
    err2 = float(jnp.max(jnp.abs(out2 - ref2)))
    assert err2 < 2e-2, err2

    print("KERNEL_OK")
</pallas_src>

<mosaic_0001>
module attributes {stable_mosaic.version = 11 : i64} {
  func.func @_conv1d_lrelu_kernel(%arg0: i32, %arg1: i32, %arg2: memref<1x4x8xf32, #tpu.memory_space<vmem>>, %arg3: memref<3x6x4xf32, #tpu.memory_space<vmem>>, %arg4: memref<6x1xf32, #tpu.memory_space<vmem>>, %arg5: memref<1x6x6xbf16, #tpu.memory_space<vmem>>) attributes {dimension_semantics = [#tpu.dimension_semantics<parallel>, #tpu.dimension_semantics<parallel>], iteration_bounds = array<i64: 2, 1>, scalar_prefetch = 0 : i64, scratch_operands = 0 : i64, tpu.core_type = #tpu.core_type<tc>, window_params = [{transform_indices = @transform_0, window_bounds = array<i64: 1, 4, 8>}, {pipeline_mode = #tpu.pipeline_mode<synchronous>, transform_indices = @transform_1, window_bounds = array<i64: 3, 6, 4>}, {pipeline_mode = #tpu.pipeline_mode<synchronous>, transform_indices = @transform_2, window_bounds = array<i64: 6, 1>}, {transform_indices = @transform_3, window_bounds = array<i64: 1, 6, 6>}]} {
    %c0 = arith.constant 0 : index
    %c0_0 = arith.constant 0 : index
    %c0_1 = arith.constant 0 : index
    %0 = vector.load %arg2[%c0, %c0_0, %c0_1] : memref<1x4x8xf32, #tpu.memory_space<vmem>>, vector<1x4x8xf32>
    %1 = vector.shape_cast %0 : vector<1x4x8xf32> to vector<4x8xf32>
    %c0_2 = arith.constant 0 : index
    %c0_3 = arith.constant 0 : index
    %c0_4 = arith.constant 0 : index
    %2 = vector.load %arg3[%c0_2, %c0_3, %c0_4] : memref<3x6x4xf32, #tpu.memory_space<vmem>>, vector<1x6x4xf32>
    %3 = vector.shape_cast %2 : vector<1x6x4xf32> to vector<6x4xf32>
    %4 = vector.extract_strided_slice %1 {offsets = [0, 0], sizes = [4, 6], strides = [1, 1]} : vector<4x8xf32> to vector<4x6xf32>
    %cst = arith.constant dense<0.000000e+00> : vector<6x6xf32>
    %5 = tpu.matmul %3, %4, %cst {dimension_numbers = #tpu.dot_dimension_numbers<[1], [0], [0], [1], [0, 0, 1, 1], [], []>} : vector<6x4xf32>, vector<4x6xf32>, vector<6x6xf32> -> vector<6x6xf32>
    %c1 = arith.constant 1 : index
    %c0_5 = arith.constant 0 : index
    %c0_6 = arith.constant 0 : index
    %6 = vector.load %arg3[%c1, %c0_5, %c0_6] : memref<3x6x4xf32, #tpu.memory_space<vmem>>, vector<1x6x4xf32>
    %7 = vector.shape_cast %6 : vector<1x6x4xf32> to vector<6x4xf32>
    %8 = vector.extract_strided_slice %1 {offsets = [0, 1], sizes = [4, 6], strides = [1, 1]} : vector<4x8xf32> to vector<4x6xf32>
    %cst_7 = arith.constant dense<0.000000e+00> : vector<6x6xf32>
    %9 = tpu.matmul %7, %8, %cst_7 {dimension_numbers = #tpu.dot_dimension_numbers<[1], [0], [0], [1], [0, 0, 1, 1], [], []>} : vector<6x4xf32>, vector<4x6xf32>, vector<6x6xf32> -> vector<6x6xf32>
    %10 = arith.addf %5, %9 : vector<6x6xf32>
    %c2 = arith.constant 2 : index
    %c0_8 = arith.constant 0 : index
    %c0_9 = arith.constant 0 : index
    %11 = vector.load %arg3[%c2, %c0_8, %c0_9] : memref<3x6x4xf32, #tpu.memory_space<vmem>>, vector<1x6x4xf32>
    %12 = vector.shape_cast %11 : vector<1x6x4xf32> to vector<6x4xf32>
    %13 = vector.extract_strided_slice %1 {offsets = [0, 2], sizes = [4, 6], strides = [1, 1]} : vector<4x8xf32> to vector<4x6xf32>
    %cst_10 = arith.constant dense<0.000000e+00> : vector<6x6xf32>
    %14 = tpu.matmul %12, %13, %cst_10 {dimension_numbers = #tpu.dot_dimension_numbers<[1], [0], [0], [1], [0, 0, 1, 1], [], []>} : vector<6x4xf32>, vector<4x6xf32>, vector<6x6xf32> -> vector<6x6xf32>
    %15 = arith.addf %10, %14 : vector<6x6xf32>
    %c0_11 = arith.constant 0 : index
    %c0_12 = arith.constant 0 : index
    %16 = vector.load %arg4[%c0_11, %c0_12] : memref<6x1xf32, #tpu.memory_space<vmem>>, vector<6x1xf32>
    %17 = vector.broadcast %16 : vector<6x1xf32> to vector<6x6xf32>
    %18 = arith.addf %15, %17 : vector<6x6xf32>
    %cst_13 = arith.constant 0.000000e+00 : f32
    %19 = vector.broadcast %cst_13 : f32 to vector<6x6xf32>
    %20 = arith.cmpf oge, %18, %19 : vector<6x6xf32>
    %cst_14 = arith.constant 3.000000e-01 : f32
    %21 = vector.broadcast %cst_14 : f32 to vector<6x6xf32>
    %22 = arith.mulf %21, %18 : vector<6x6xf32>
    %23 = arith.select %20, %18, %22 : vector<6x6xi1>, vector<6x6xf32>
    %24 = arith.truncf %23 : vector<6x6xf32> to vector<6x6xbf16>
    %c0_15 = arith.constant 0 : index
    %c0_16 = arith.constant 0 : index
    %c0_17 = arith.constant 0 : index
    %25 = vector.load %arg5[%c0_15, %c0_16, %c0_17] : memref<1x6x6xbf16, #tpu.memory_space<vmem>>, vector<1x6x6xbf16>
    %26 = vector.shape_cast %25 : vector<1x6x6xbf16> to vector<6x6xbf16>
    %27 = vector.shape_cast %24 : vector<6x6xbf16> to vector<1x6x6xbf16>
    tpu.vector_store %arg5[%c0_15, %c0_16, %c0_17], %27 {strides = array<i32>} : memref<1x6x6xbf16, #tpu.memory_space<vmem>>, vector<1x6x6xbf16>,
    return
  }
  func.func @transform_0(%arg0: i32, %arg1: i32) -> (i32, i32, i32) {
    %c0_i32 = arith.constant 0 : i32
    %c0_i32_0 = arith.constant 0 : i32
    %c0_i32_1 = arith.constant 0 : i32
    return %arg0, %c0_i32, %c0_i32_0 : i32, i32, i32
  }
  func.func @transform_1(%arg0: i32, %arg1: i32) -> (i32, i32, i32) {
    %c0_i32 = arith.constant 0 : i32
    %c0_i32_0 = arith.constant 0 : i32
    %c0_i32_1 = arith.constant 0 : i32
    %c0_i32_2 = arith.constant 0 : i32
    return %c0_i32, %c0_i32_0, %c0_i32_1 : i32, i32, i32
  }
  func.func @transform_2(%arg0: i32, %arg1: i32) -> (i32, i32) {
    %c0_i32 = arith.constant 0 : i32
    %c0_i32_0 = arith.constant 0 : i32
    %c0_i32_1 = arith.constant 0 : i32
    return %c0_i32, %c0_i32_0 : i32, i32
  }
  func.func @transform_3(%arg0: i32, %arg1: i32) -> (i32, i32, i32) {
    %c0_i32 = arith.constant 0 : i32
    %c0_i32_0 = arith.constant 0 : i32
    return %arg0, %c0_i32, %arg1 : i32, i32, i32
  }
}

</mosaic_0001>

<bundles_post_ra>
// kernel: tpu_custom_call.1
= control target key start
LH: loop header
LB: loop body
LE: loop exit
PB: predicated region body
PF: predicated region fallthrough
CT: control target
= control target key end

     0   :  { %s627_s12 = smov 0   ;;  %s629_s13 = smov 0   ;;  %s688_s0 = inlined_call_operand.vmem [shape: f32[2,4,8], index: 0, kind: input, shape index: {}]   ;;  %s689_s1 = inlined_call_operand.vmem [shape: f32[3,6,4], index: 1, kind: input, shape index: {}]   ;;  %s690_s2 = inlined_call_operand.vmem [shape: f32[6,1], index: 2, kind: input, shape index: {}]   ;;  %s691_s3 = inlined_call_operand.vmem [shape: bf16[2,6,6], index: 3, kind: output, shape index: {}]  }
   0x1   :  { %s631_s14 = smov 0  }
   0x2 LB: > { %s25_s15 = sadd.s32 1, %s596_s13  ;;  %p513_p0 = scmp.ge.s32.totalorder %s600_s14, 1  ;;  %s600_s14 = sphi %s631_s14, %s13_s14   ;;  %s596_s13 = sphi %s629_s13, %s693_s13   ;;  %s592_s12 = sphi %s627_s12, %s692_s12  }
   0x3   : > { %p27_p1 = scmp.ge.s32.totalorder %s25_s15, 2  ;;  %p150_p2 = scmp.lt.s32.totalorder %s600_s14, 3 }
   0x5   : > { %s695_s15 = smov (%p27_p1, %s25_s15), 0  ;;  %p151_p3 = pnand %p513_p0, %p150_p2 }
   0x6   : > { %p175_p4 = scmp.lt.s32.totalorder (!%p151_p3), %s592_s12, 1  ;;  %v602_v0 = vmov (!%p151_p3), 0.0   ;;  %vm603_vm0 = vmmov (!%p151_p3), 0   ;;  %v425_v1 = vld [vmem:[%s690_s2] sm:$0x3f] (!%p151_p3)  ;;  %v604_v2 = vmov (!%p151_p3), 0  }
   0x7   : > { %154 = sbr.rel (%p151_p3) target bundleno = 360 (0x168), region = 32  ;;  %532 = vmatprep.subr.mxu0 (!%p151_p3), %v602_v0  ;;  %534 = vmatprep.mubr.msk.f32.mxu0 (!%p151_p3), %vm603_vm0, %v602_v0  ;;  %vm197_vm1 = vcmask (!%p151_p3), 1043456   ;;  %vm193_vm2 = vcmask (!%p151_p3), 31744   ;;  %v187_v3 = vld [vmem:[%s689_s1] sm:$0x3f] (!%p151_p3)  ;;  %s605_s24 = smov (!%p151_p3), 127  }
   0x8   : > { %537 = vmatprep.subr.mxu1 (!%p151_p3), %v602_v0  ;;  %539 = vmatprep.mubr.msk.f32.mxu1 (!%p151_p3), %vm603_vm0, %v602_v0  ;;  %s606_s25 = smov (!%p151_p3), 126   ;;  %v516_v5 = vld [vmem:[%s689_s1 + $0x8] sm:$0x3f] (!%p151_p3)  ;;  %v521_v7 = vld [vmem:[%s689_s1 + $0x10] sm:$0x3f] (!%p151_p3)  ;;  %vm436_vm4 = vcmask (!%p151_p3), 43008  }
   0x9   : > { %576 = vset.pattern.permute.xlu1 (!%p151_p3), %v604_v2  ;;  %577 = vset.pattern.permute.xlu0 (!%p151_p3), %v604_v2 }
   0xa   : > { %428 = vperm.xlu1 (!%p151_p3), %576, %v425_v1  }
   0xe   : > { %s697_s12 = smov (!%p175_p4, %s592_s12), 1 }
   0xf   : > { %s514_s18 = sshll.u32 %s697_s12, 2 }
  0x10   : > { %s178_s21 = scalar_lea.vmem %s688_s0, %s514_s18  ;;  %s185_s5 = scalar_lea.vmem %s691_s3, %s514_s18 }
  0x11   : > { %v186_v4 = vld [vmem:[%s178_s21] sm:$0xf] }
  0x12   : > { %191 = vrot.lane.b32.xlu0 %v186_v4, %s605_s24  ;;  %538 = vmatpush3.msk.msra.mxu1 %vm197_vm1, %v186_v4 }
  0x13   : > { %540 = vmatmul.mubr.msk.f32.vlgmr.msra.gmra.mrb[0].mxu1 %vm193_vm2, %v187_v3 }
  0x16   : > { %347 = vrot.lane.b32.xlu0 %v186_v4, %s606_s25 }
  0x84   : > { %v192_v6 = vpop.permute.xlu0 %191 }
  0x85   : > { %533 = vmatpush3.msk.msra.mxu0 %vm197_vm1, %v192_v6 }
  0x86   : > { %535 = vmatmul.mubr.msk.f32.vlgmr.msra.gmra.mrb[0].mxu0 %vm193_vm2, %v516_v5  ;;  %542 = vmatprep.subr.mxu0 %v602_v0 }
  0x87   : > { %544 = vmatprep.mubr.msk.f32.mxu0 %vm603_vm0, %v602_v0 }
  0x88   : > { %v348_v8 = vpop.permute.xlu0 %347 }
  0x89   : > { %543 = vmatpush3.msk.msra.mxu0 %vm197_vm1, %v348_v8  ;;  %v429_v15 = vpop.permute.xlu1 %428 }
  0x8a   : > { %545 = vmatmul.mubr.msk.f32.vlgmr.msra.gmra.mrb[2].mxu0 %vm193_vm2, %v521_v7 }
  0xe6   : > { %v341_v9 = vpop.f32.mrb[0].mxu1 }
  0xe7   : > { %v541_v10 = vpop.f32.mrb[1].mxu1 }
 0x159   : > { %v266_v11 = vpop.f32.mrb[0].mxu0 }
 0x15a   : > { %v342_v12 = vadd.f32 %v341_v9, %v266_v11  ;;  %v536_v13 = vpop.f32.mrb[1].mxu0 }
 0x15d   : > { %v420_v14 = vpop.f32.mrb[2].mxu0 }
 0x15e   : > { %v424_v16 = vadd.f32 %v420_v14, %v342_v12  ;;  %v546_v17 = vpop.f32.mrb[3].mxu0 }
 0x160   : > { %v431_v18 = vadd.f32 %v429_v15, %v424_v16 }
 0x162   : > { %vm432_vm3 = vcmp.ge.f32.partialorder %v431_v18, 0.0  ;;  %v433_v19 = vmul.f32 0.3, %v431_v18 }
 0x164   : > { %v434_v20 = vsel %vm432_vm3, %v431_v18, %v433_v19 }
 0x165   : > { %v435_v21 = vpack.c.bf16 %v434_v20, %v434_v20 }
 0x167   : > { %437 = vst.msk [vmem:[%s185_s5] sm:$0x7] %vm436_vm4, %v435_v21 }
 0x168 PF: > { %s13_s14 = sadd.s32 1, %s600_s14   ;;  %s692_s12 = smov %s596_s13 }
 0x169   : > { %p10_p5 = scmp.ge.s32.totalorder %s13_s14, 4   ;;  %s693_s13 = smov %s695_s15 }
 0x16b   :  { %12 = sbr.rel (!%p10_p5) target bundleno = 2 (0x2), region = 64 }

</bundles_post_ra>
